<compile_context>
chip_gen: v7x
topology: tpu7x:2x2x1
jax: 0.10.0
libtpu: 0.0.40
codegen_flags: <defaults>
</compile_context>

<pallas_src>
import functools

import jax
import jax.numpy as jnp
from jax.experimental import pallas as pl
from jax.experimental.pallas import tpu as pltpu

IGNORE_LB = 255
TARGET_ROWS = 256   # rows of 128 lanes per grid step -> 32768 spatial positions


def _ce_sum_kernel(logits_ref, labels_ref, out_ref, acc_ref, *,
                   ignore_lb, n_classes):
    """Accumulates sum over positions of masked -log_softmax(logits)[label].

    Block shapes:
      logits_ref: (1, C, ROWS, 128)  input dtype, lane-dense spatial
      labels_ref: (1, 1, ROWS, 128)  int32, padded with ignore_lb past S
      out_ref:    (1, 1, 8, 128)     f32 per-(batch, split) partial sum
      acc_ref:    (ROWS, 128)        f32 running vector accumulator (scratch)
    """
    t = pl.program_id(2)
    nt = pl.num_programs(2)

    @pl.when(t == 0)
    def _():
        acc_ref[...] = jnp.zeros_like(acc_ref)

    lbl = labels_ref[0, 0]                                     # (ROWS, 128) i32

    # Pass 1: per-position max over classes (C-1 dense VPU maxes).
    m = logits_ref[0, 0].astype(jnp.float32)
    for c in range(1, n_classes):
        m = jnp.maximum(m, logits_ref[0, c].astype(jnp.float32))

    # Pass 2: stable sum-exp + pick the label's logit.  Unrolled over the small
    # class axis so we never materialize a (C, ROWS, 128) iota/one-hot temp.
    se = jnp.zeros_like(m)
    picked = jnp.zeros_like(m)
    for c in range(n_classes):
        xc = logits_ref[0, c].astype(jnp.float32)
        se = se + jnp.exp(xc - m)
        picked = jnp.where(lbl == c, xc, picked)

    lse = jnp.log(se) + m
    # Ignored labels (and padded tail positions, which the wrapper filled with
    # ignore_lb) contribute exactly 0; the select also stops NaN/Inf from any
    # out-of-bounds logit garbage in the tail block from propagating.
    loss = jnp.where(lbl == ignore_lb, 0.0, lse - picked)

    acc_ref[...] += loss                                       # pure VPU adds

    @pl.when(t == nt - 1)
    def _():
        # Single cross-lane/sublane reduce per (batch, split).
        out_ref[...] = jnp.zeros_like(out_ref) + jnp.sum(acc_ref[...])


def normal_loss(logits, labels, ignore_lb=IGNORE_LB):
    """logits: (N, C, H, W) float; labels: (N, H, W) int. Returns scalar f32."""
    N, C, H, W = logits.shape
    S = H * W
    M = N * S

    # ---- Lane-dense spatial layout ------------------------------------------
    # (N, C, H, W) -> (N, C, R, 128) is a free view when S % 128 == 0.
    # Do NOT pre-cast bf16 logits here; the only upcast happens in-kernel.
    x = logits.reshape(N, C, S)
    y = labels.astype(jnp.int32).reshape(N, S)
    if S % 128 != 0:
        # Rare fallback: pad spatial to the lane width (copies logits once).
        pad = (-S) % 128
        x = jnp.pad(x, ((0, 0), (0, 0), (0, pad)))
        S128 = S + pad
    else:
        S128 = S
    R = S128 // 128
    x = x.reshape(N, C, R, 128)

    # Rows per grid step (multiple of 8 or the full extent).
    rows = R if R <= TARGET_ROWS else TARGET_ROWS
    grid_s = pl.cdiv(R, rows)

    # Give v7x's two TensorCores parallel work even when N == 1 by splitting
    # the spatial range into independent halves (costs nothing on v5e/v6e).
    n_split = 2 if (N == 1 and grid_s >= 2) else 1
    tiles = pl.cdiv(grid_s, n_split)

    # Pad labels (cheap) with ignore_lb up to the full tiled extent so no
    # per-step position mask is needed in the kernel.
    r_pad = n_split * tiles * rows
    y = jnp.pad(y, ((0, 0), (0, r_pad * 128 - S)), constant_values=ignore_lb)
    y = y.reshape(N, 1, r_pad, 128)

    def logits_map(n, p, t):
        # Clamp so a split's trailing tile never addresses a fully OOB block;
        # the duplicated read is masked by the ignore-padded labels.
        return (n, 0, jnp.minimum(p * tiles + t, grid_s - 1), 0)

    def labels_map(n, p, t):
        return (n, 0, p * tiles + t, 0)

    kernel = functools.partial(_ce_sum_kernel, ignore_lb=ignore_lb, n_classes=C)

    cost = pl.CostEstimate(
        flops=int(6 * C * M),
        transcendentals=int((C + 1) * M),
        bytes_accessed=int(N * C * S128 * x.dtype.itemsize
                           + N * r_pad * 128 * 4
                           + N * n_split * 8 * 128 * 4),
    )

    partials = pl.pallas_call(
        kernel,
        out_shape=jax.ShapeDtypeStruct((N, n_split, 8, 128), jnp.float32),
        grid_spec=pltpu.PrefetchScalarGridSpec(
            num_scalar_prefetch=0,
            grid=(N, n_split, tiles),
            in_specs=[
                pl.BlockSpec((1, C, rows, 128), logits_map),
                pl.BlockSpec((1, 1, rows, 128), labels_map),
            ],
            out_specs=pl.BlockSpec((1, 1, 8, 128), lambda n, p, t: (n, p, 0, 0)),
            scratch_shapes=[pltpu.VMEM((rows, 128), jnp.float32)],
        ),
        compiler_params=pltpu.CompilerParams(
            dimension_semantics=("parallel", "parallel", "arbitrary")),
        cost_estimate=cost,
    )(x, y)

    # Per-(batch, split) partial sums live at [..., 0, 0]; tiny final reduce
    # and the divide-by-M (torch.mean counts ignored pixels) are scalar glue.
    total = jnp.sum(partials[:, :, 0, 0])
    return (total / jnp.float32(M)).astype(jnp.float32)


def _reference(logits, labels, ignore_lb=IGNORE_LB):
    logp = jax.nn.log_softmax(logits.astype(jnp.float32), axis=1)  # (N,C,H,W)
    lbl = labels.astype(jnp.int32)
    safe = jnp.where(lbl == ignore_lb, 0, lbl)
    picked = jnp.take_along_axis(logp, safe[:, None, :, :], axis=1)[:, 0]
    loss = jnp.where(lbl == ignore_lb, 0.0, -picked)
    return jnp.mean(loss)


if __name__ == "__main__":
    key = jax.random.PRNGKey(0)
    k1, k2, k3, k4 = jax.random.split(key, 4)

    # Small primary test (module's expected NCHW layout).
    N, C, H, W = 2, 4, 16, 16
    logits = jax.random.normal(k1, (N, C, H, W), dtype=jnp.float32)
    labels = jax.random.randint(k2, (N, H, W), 0, C, dtype=jnp.int32)
    labels = labels.at[:, 0, :].set(IGNORE_LB)      # exercise the ignore mask
    out = jax.block_until_ready(normal_loss(logits, labels))
    ref = _reference(logits, labels)
    assert jnp.allclose(out, ref, rtol=1e-5, atol=1e-5), (out, ref)

    # Single-batch test exercising the spatial split (both v7x cores), the
    # multi-tile accumulator, the clamped tail block and the label padding.
    N2, C2, H2, W2 = 1, 4, 192, 192
    logits2 = jax.random.normal(k3, (N2, C2, H2, W2), dtype=jnp.float32)
    labels2 = jax.random.randint(k4, (N2, H2, W2), 0, C2, dtype=jnp.int32)
    labels2 = labels2.at[:, :, 5].set(IGNORE_LB)
    out2 = jax.block_until_ready(normal_loss(logits2, labels2))
    ref2 = _reference(logits2, labels2)
    assert jnp.allclose(out2, ref2, rtol=1e-5, atol=1e-5), (out2, ref2)

    print("KERNEL_OK")
</pallas_src>

<mosaic_0001>
module attributes {stable_mosaic.version = 11 : i64} {
  func.func @_ce_sum_kernel(%arg0: i32, %arg1: i32, %arg2: i32, %arg3: memref<1x4x2x128xf32, #tpu.memory_space<vmem>>, %arg4: memref<1x1x2x128xi32, #tpu.memory_space<vmem>>, %arg5: memref<1x1x8x128xf32, #tpu.memory_space<vmem>>, %arg6: memref<2x128xf32, #tpu.memory_space<vmem>>) attributes {dimension_semantics = [#tpu.dimension_semantics<parallel>, #tpu.dimension_semantics<parallel>, #tpu.dimension_semantics<arbitrary>], iteration_bounds = array<i64: 2, 1, 1>, scalar_prefetch = 0 : i64, scratch_operands = 1 : i64, tpu.core_type = #tpu.core_type<tc>, window_params = [{transform_indices = @transform_0, window_bounds = array<i64: 1, 4, 2, 128>}, {transform_indices = @transform_1, window_bounds = array<i64: 1, 1, 2, 128>}, {transform_indices = @transform_2, window_bounds = array<i64: 1, 1, 8, 128>}]} {
    %c0_i32 = arith.constant 0 : i32
    %0 = arith.cmpi eq, %arg2, %c0_i32 : i32
    %1 = arith.extui %0 : i1 to i32
    %c0_i32_0 = arith.constant 0 : i32
    %2 = arith.cmpi ne, %1, %c0_i32_0 : i32
    scf.if %2 {
      %cst_42 = arith.constant 0.000000e+00 : f32
      %63 = vector.broadcast %cst_42 : f32 to vector<2x128xf32>
      %c0_43 = arith.constant 0 : index
      %c0_44 = arith.constant 0 : index
      %64 = vector.load %arg6[%c0_43, %c0_44] : memref<2x128xf32, #tpu.memory_space<vmem>>, vector<2x128xf32>
      tpu.vector_store %arg6[%c0_43, %c0_44], %63 {strides = array<i32>} : memref<2x128xf32, #tpu.memory_space<vmem>>, vector<2x128xf32>,
    } else {
    }
    %c0 = arith.constant 0 : index
    %c0_1 = arith.constant 0 : index
    %c0_2 = arith.constant 0 : index
    %c0_3 = arith.constant 0 : index
    %3 = vector.load %arg4[%c0, %c0_1, %c0_2, %c0_3] : memref<1x1x2x128xi32, #tpu.memory_space<vmem>>, vector<1x1x2x128xi32>
    %4 = vector.shape_cast %3 : vector<1x1x2x128xi32> to vector<2x128xi32>
    %c0_4 = arith.constant 0 : index
    %c0_5 = arith.constant 0 : index
    %c0_6 = arith.constant 0 : index
    %c0_7 = arith.constant 0 : index
    %5 = vector.load %arg3[%c0_4, %c0_5, %c0_6, %c0_7] : memref<1x4x2x128xf32, #tpu.memory_space<vmem>>, vector<1x1x2x128xf32>
    %6 = vector.shape_cast %5 : vector<1x1x2x128xf32> to vector<2x128xf32>
    %c0_8 = arith.constant 0 : index
    %c1 = arith.constant 1 : index
    %c0_9 = arith.constant 0 : index
    %c0_10 = arith.constant 0 : index
    %7 = vector.load %arg3[%c0_8, %c1, %c0_9, %c0_10] : memref<1x4x2x128xf32, #tpu.memory_space<vmem>>, vector<1x1x2x128xf32>
    %8 = vector.shape_cast %7 : vector<1x1x2x128xf32> to vector<2x128xf32>
    %9 = arith.maximumf %6, %8 : vector<2x128xf32>
    %c0_11 = arith.constant 0 : index
    %c2 = arith.constant 2 : index
    %c0_12 = arith.constant 0 : index
    %c0_13 = arith.constant 0 : index
    %10 = vector.load %arg3[%c0_11, %c2, %c0_12, %c0_13] : memref<1x4x2x128xf32, #tpu.memory_space<vmem>>, vector<1x1x2x128xf32>
    %11 = vector.shape_cast %10 : vector<1x1x2x128xf32> to vector<2x128xf32>
    %12 = arith.maximumf %9, %11 : vector<2x128xf32>
    %c0_14 = arith.constant 0 : index
    %c3 = arith.constant 3 : index
    %c0_15 = arith.constant 0 : index
    %c0_16 = arith.constant 0 : index
    %13 = vector.load %arg3[%c0_14, %c3, %c0_15, %c0_16] : memref<1x4x2x128xf32, #tpu.memory_space<vmem>>, vector<1x1x2x128xf32>
    %14 = vector.shape_cast %13 : vector<1x1x2x128xf32> to vector<2x128xf32>
    %15 = arith.maximumf %12, %14 : vector<2x128xf32>
    %cst = arith.constant 0.000000e+00 : f32
    %16 = vector.broadcast %cst : f32 to vector<2x128xf32>
    %cst_17 = arith.constant 0.000000e+00 : f32
    %17 = vector.broadcast %cst_17 : f32 to vector<2x128xf32>
    %c0_18 = arith.constant 0 : index
    %c0_19 = arith.constant 0 : index
    %c0_20 = arith.constant 0 : index
    %c0_21 = arith.constant 0 : index
    %18 = vector.load %arg3[%c0_18, %c0_19, %c0_20, %c0_21] : memref<1x4x2x128xf32, #tpu.memory_space<vmem>>, vector<1x1x2x128xf32>
    %19 = vector.shape_cast %18 : vector<1x1x2x128xf32> to vector<2x128xf32>
    %20 = arith.subf %19, %15 : vector<2x128xf32>
    %21 = math.exp %20 : vector<2x128xf32>
    %22 = arith.addf %16, %21 : vector<2x128xf32>
    %c0_i32_22 = arith.constant 0 : i32
    %23 = vector.broadcast %c0_i32_22 : i32 to vector<2x128xi32>
    %24 = arith.cmpi eq, %4, %23 : vector<2x128xi32>
    %25 = arith.select %24, %19, %17 : vector<2x128xi1>, vector<2x128xf32>
    %c0_23 = arith.constant 0 : index
    %c1_24 = arith.constant 1 : index
    %c0_25 = arith.constant 0 : index
    %c0_26 = arith.constant 0 : index
    %26 = vector.load %arg3[%c0_23, %c1_24, %c0_25, %c0_26] : memref<1x4x2x128xf32, #tpu.memory_space<vmem>>, vector<1x1x2x128xf32>
    %27 = vector.shape_cast %26 : vector<1x1x2x128xf32> to vector<2x128xf32>
    %28 = arith.subf %27, %15 : vector<2x128xf32>
    %29 = math.exp %28 : vector<2x128xf32>
    %30 = arith.addf %22, %29 : vector<2x128xf32>
    %c1_i32 = arith.constant 1 : i32
    %31 = vector.broadcast %c1_i32 : i32 to vector<2x128xi32>
    %32 = arith.cmpi eq, %4, %31 : vector<2x128xi32>
    %33 = arith.select %32, %27, %25 : vector<2x128xi1>, vector<2x128xf32>
    %c0_27 = arith.constant 0 : index
    %c2_28 = arith.constant 2 : index
    %c0_29 = arith.constant 0 : index
    %c0_30 = arith.constant 0 : index
    %34 = vector.load %arg3[%c0_27, %c2_28, %c0_29, %c0_30] : memref<1x4x2x128xf32, #tpu.memory_space<vmem>>, vector<1x1x2x128xf32>
    %35 = vector.shape_cast %34 : vector<1x1x2x128xf32> to vector<2x128xf32>
    %36 = arith.subf %35, %15 : vector<2x128xf32>
    %37 = math.exp %36 : vector<2x128xf32>
    %38 = arith.addf %30, %37 : vector<2x128xf32>
    %c2_i32 = arith.constant 2 : i32
    %39 = vector.broadcast %c2_i32 : i32 to vector<2x128xi32>
    %40 = arith.cmpi eq, %4, %39 : vector<2x128xi32>
    %41 = arith.select %40, %35, %33 : vector<2x128xi1>, vector<2x128xf32>
    %c0_31 = arith.constant 0 : index
    %c3_32 = arith.constant 3 : index
    %c0_33 = arith.constant 0 : index
    %c0_34 = arith.constant 0 : index
    %42 = vector.load %arg3[%c0_31, %c3_32, %c0_33, %c0_34] : memref<1x4x2x128xf32, #tpu.memory_space<vmem>>, vector<1x1x2x128xf32>
    %43 = vector.shape_cast %42 : vector<1x1x2x128xf32> to vector<2x128xf32>
    %44 = arith.subf %43, %15 : vector<2x128xf32>
    %45 = math.exp %44 : vector<2x128xf32>
    %46 = arith.addf %38, %45 : vector<2x128xf32>
    %c3_i32 = arith.constant 3 : i32
    %47 = vector.broadcast %c3_i32 : i32 to vector<2x128xi32>
    %48 = arith.cmpi eq, %4, %47 : vector<2x128xi32>
    %49 = arith.select %48, %43, %41 : vector<2x128xi1>, vector<2x128xf32>
    %50 = math.log %46 : vector<2x128xf32>
    %51 = arith.addf %50, %15 : vector<2x128xf32>
    %c255_i32 = arith.constant 255 : i32
    %52 = vector.broadcast %c255_i32 : i32 to vector<2x128xi32>
    %53 = arith.cmpi eq, %4, %52 : vector<2x128xi32>
    %54 = arith.subf %51, %49 : vector<2x128xf32>
    %cst_35 = arith.constant 0.000000e+00 : f32
    %55 = vector.broadcast %cst_35 : f32 to vector<2x128xf32>
    %56 = arith.select %53, %55, %54 : vector<2x128xi1>, vector<2x128xf32>
    %c0_36 = arith.constant 0 : index
    %c0_37 = arith.constant 0 : index
    %57 = vector.load %arg6[%c0_36, %c0_37] : memref<2x128xf32, #tpu.memory_space<vmem>>, vector<2x128xf32>
    %58 = arith.addf %57, %56 : vector<2x128xf32>
    %c0_38 = arith.constant 0 : index
    %c0_39 = arith.constant 0 : index
    %59 = vector.load %arg6[%c0_38, %c0_39] : memref<2x128xf32, #tpu.memory_space<vmem>>, vector<2x128xf32>
    tpu.vector_store %arg6[%c0_38, %c0_39], %58 {strides = array<i32>} : memref<2x128xf32, #tpu.memory_space<vmem>>, vector<2x128xf32>,
    %c0_i32_40 = arith.constant 0 : i32
    %60 = arith.cmpi eq, %arg2, %c0_i32_40 : i32
    %61 = arith.extui %60 : i1 to i32
    %c0_i32_41 = arith.constant 0 : i32
    %62 = arith.cmpi ne, %61, %c0_i32_41 : i32
    scf.if %62 {
      %cst_42 = arith.constant 0.000000e+00 : f32
      %63 = vector.broadcast %cst_42 : f32 to vector<1x1x8x128xf32>
      %c0_43 = arith.constant 0 : index
      %c0_44 = arith.constant 0 : index
      %64 = vector.load %arg6[%c0_43, %c0_44] : memref<2x128xf32, #tpu.memory_space<vmem>>, vector<2x128xf32>
      %65 = vector.shape_cast %64 : vector<2x128xf32> to vector<1x2x128xf32>
      %cst_45 = arith.constant dense<0.000000e+00> : vector<1xf32>
      %66 = vector.multi_reduction <add>, %65, %cst_45 [1, 2] : vector<1x2x128xf32> to vector<1xf32>
      %67 = vector.shape_cast %66 : vector<1xf32> to vector<1x1x1xf32>
      %68 = vector.extract %67[0, 0, 0] : f32 from vector<1x1x1xf32>
      %69 = vector.broadcast %68 : f32 to vector<1x1x8x128xf32>
      %70 = arith.addf %63, %69 : vector<1x1x8x128xf32>
      %c0_46 = arith.constant 0 : index
      %c0_47 = arith.constant 0 : index
      %c0_48 = arith.constant 0 : index
      %c0_49 = arith.constant 0 : index
      %71 = vector.load %arg5[%c0_46, %c0_47, %c0_48, %c0_49] : memref<1x1x8x128xf32, #tpu.memory_space<vmem>>, vector<1x1x8x128xf32>
      tpu.vector_store %arg5[%c0_46, %c0_47, %c0_48, %c0_49], %70 {strides = array<i32>} : memref<1x1x8x128xf32, #tpu.memory_space<vmem>>, vector<1x1x8x128xf32>,
    } else {
    }
    return
  }
  func.func @transform_0(%arg0: i32, %arg1: i32, %arg2: i32) -> (i32, i32, i32, i32) {
    %c1_i32 = arith.constant 1 : i32
    %0 = arith.muli %arg1, %c1_i32 : i32
    %1 = arith.addi %0, %arg2 : i32
    %c0_i32 = arith.constant 0 : i32
    %2 = arith.minsi %1, %c0_i32 : i32
    %c0_i32_0 = arith.constant 0 : i32
    %c0_i32_1 = arith.constant 0 : i32
    %c0_i32_2 = arith.constant 0 : i32
    return %arg0, %c0_i32_0, %2, %c0_i32_1 : i32, i32, i32, i32
  }
  func.func @transform_1(%arg0: i32, %arg1: i32, %arg2: i32) -> (i32, i32, i32, i32) {
    %c1_i32 = arith.constant 1 : i32
    %0 = arith.muli %arg1, %c1_i32 : i32
    %1 = arith.addi %0, %arg2 : i32
    %c0_i32 = arith.constant 0 : i32
    %c0_i32_0 = arith.constant 0 : i32
    %c0_i32_1 = arith.constant 0 : i32
    return %arg0, %c0_i32, %1, %c0_i32_0 : i32, i32, i32, i32
  }
  func.func @transform_2(%arg0: i32, %arg1: i32, %arg2: i32) -> (i32, i32, i32, i32) {
    %c0_i32 = arith.constant 0 : i32
    %c0_i32_0 = arith.constant 0 : i32
    %c0_i32_1 = arith.constant 0 : i32
    return %arg0, %arg1, %c0_i32, %c0_i32_0 : i32, i32, i32, i32
  }
}

</mosaic_0001>

<bundles_post_ra>
// kernel: tpu_custom_call.1
= control target key start
LH: loop header
LB: loop body
LE: loop exit
PB: predicated region body
PF: predicated region fallthrough
CT: control target
= control target key end

     0   :  { %7 = vsyncpa [#allocation4], 0  ;;  %s924_s0 = inlined_call_operand.hbm [shape: f32[2,4,2,128], index: 0, kind: input, shape index: {}]   ;;  %s925_s1 = inlined_call_operand.hbm [shape: s32[2,1,2,128], index: 1, kind: input, shape index: {}]   ;;  %s926_s2 = inlined_call_operand.hbm [shape: f32[2,1,8,128], index: 2, kind: output, shape index: {}]  }
   0x1   :  { %9 = vsyncpa [#allocation4 + $0x1], 0 }
   0x2   :  { %10 = vsyncpa [#allocation7], 0 }
   0x3   :  { %12 = vsyncpa [#allocation7 + $0x1], 0 }
   0x4   :  { %13 = vsyncpa [#allocation5], 0 }
   0x5   :  { %15 = vsyncpa [#allocation5 + $0x1], 0  ;;  %s705_s9 = smov 0   ;;  %s707_s10 = smov 0  }
   0x6   :  { %s709_s11 = smov 0   ;;  %s711_s12 = smov 0  }
   0x7   :  { %s713_s13 = smov 0   ;;  %s715_s14 = smov 0  }
   0x8 LB: > { %s433_s15 = sadd.s32 4294967295, %s682_s14   ;;  %s434_s16 = sadd.s32 4294967294, %s682_s14   ;;  %s682_s14 = sphi %s715_s14, %s21_s14   ;;  %s678_s13 = sphi %s713_s13, %s945_s13   ;;  %s674_s12 = sphi %s711_s12, %s944_s12   ;;  %s670_s11 = sphi %s709_s11, %s943_s11   ;;  %s666_s10 = sphi %s707_s10, %s942_s10   ;;  %s662_s9 = sphi %s705_s9, %s941_s9  }
   0x9   : > { %s40_s17 = sadd.s32 1, %s678_s13  ;;  %s55_s18 = sadd.s32 1, %s670_s11 }
   0xa   : > { %p42_p0 = scmp.ge.s32.totalorder %s40_s17, 2  ;;  %p62_p1 = scmp.ne.s32.totalorder %s670_s11, %s666_s10 }
   0xb   : > { %p63_p2 = scmp.eq.s32.totalorder %s682_s14, 0  ;;  %p68_p3 = scmp.ne.s32.totalorder %s666_s10, %s662_s9 }
   0xc   : > { %s947_s17 = smov (%p42_p0, %s40_s17), 0  ;;  %p69_p5 = scmp.eq.s32.totalorder %s433_s15, 0 }
   0xd   : > { %p746_p4 = por %p63_p2, %p62_p1  ;;  %s50_s20 = ssub.s32 %s678_s13, %s947_s17 }
   0xe   : > { %p124_p6 = scmp.eq.s32.totalorder %s433_s15, 1  ;;  %p53_p7 = scmp.eq.s32.totalorder %s50_s20, 0 }
   0xf   : > { %p752_p8 = por %p69_p5, %p68_p3  ;;  %p130_p10 = scmp.eq.s32.totalorder %s434_s16, 1 }
  0x10   : > { %p756_p9 = por %p124_p6, %p62_p1  ;;  %p473_p13 = scmp.lt.s32.totalorder %s682_s14, 2 }
  0x11   : > { %s930_s21 = scalar_select %p752_p8, 1, 0 }
  0x12   : > { %s931_s22 = scalar_select %p756_p9, 1, 0 }
  0x13   : > { %s761_s23 = scalar_select %p53_p7, %s670_s11, %s55_s18  }
  0x14   : > { %p763_p11 = por %p130_p10, %p68_p3  ;;  %s770_s25 = sand.u32 1, %s670_s11  }
  0x15   : > { %s437_s26 = sshll.u32 %s770_s25, 3  ;;  %s453_s27 = sshll.u32 %s678_s13, 7 }
  0x16   : > { %s932_s24 = scalar_select %p763_p11, 1, 0 }
  0x17   : > { %s777_s30 = scalar_lea.hbm %s924_s0, %s453_s27  ;;  %s154_s3 = scalar_lea.vmem [#allocation3], %s437_s26 }
  0x18   : > { %s165_s4 = sshll.u32 %s154_s3, 4  ;;  %p783_p0 = pnand %p473_p13, %p746_p4  ;;  %s779_s4 = int_to_ptr.vmem [resolvable:$true] %s165_s4 }
  0x19   : > { %s151_s6 = scalar_lea.sflag [#allocation4], %s770_s25  ;;  %s536_s7 = scalar_lea.hbm %s777_s30, 128 }
  0x1a   : > { %p537_p2 = scmp.ne.s32.totalorder %s777_s30, %s536_s7  ;;  %p538_p3 = pneg %p783_p0 }
  0x1b   : > { %s541_s16 = scalar_lea.hbm %s924_s0, 256  ;;  %p542_p4 = scmp.lt.u32.totalorder %s777_s30, %s924_s0 }
  0x1c   : > { %p539_p5 = pnand %p538_p3, %p537_p2  ;;  %p543_p7 = scmp.lt.u32.totalorder %s541_s16, %s536_s7 }
  0x1d   : > { %p545_p13 = scmp.lt.u32.totalorder %s536_s7, %s777_s30 }
  0x1e   : > { %p540_p6 = pneg %p539_p5  ;;  %p544_p10 = por %p543_p7, %p542_p4 }
  0x20   : > { %p546_p12 = por %p545_p13, %p544_p10 }
  0x22   : > { %p547_p1 = pnand %p546_p12, %p540_p6 }
  0x24   : > { %550 = shalt.err (!%p547_p1)
}
  0x25   : > { %s551_s20 = scalar_lea.vmem %s779_s4, 128  ;;  %s684_s26 = smov [#allocation3]  }
  0x26   : > { %p552_p2 = scmp.ne.s32.totalorder %s779_s4, %s551_s20  ;;  %s556_s27 = sshll.u32 %s684_s26, 4  ;;  %s557_s27 = int_to_ptr.vmem [resolvable:$false] %s556_s27 }
  0x27   : > { %s558_s28 = scalar_lea.vmem %s557_s27, 256  ;;  %p559_p9 = scmp.lt.s32.totalorder %s779_s4, %s557_s27 }
  0x28   : > { %p554_p5 = pnand %p552_p2, %p538_p3  ;;  %p560_p4 = scmp.lt.s32.totalorder %s558_s28, %s551_s20 }
  0x2a   : > { %p555_p11 = pneg %p554_p5  ;;  %p561_p7 = por %p560_p4, %p559_p9 }
  0x2c   : > { %p562_p10 = pnand %p561_p7, %p555_p11 }
  0x2e   : > { %565 = shalt.err (!%p562_p10)
}
  0x2f   : > { %s685_s29 = smov 32   ;;  %s686_s3 = smov 2  }
  0x30   : > { %465 = dma.hbm_to_vmem [thread:$0]  (!%p783_p0), %s777_s30, 128, %s779_s4, %s151_s6, %s685_s29, %s685_s29, %s686_s3  }
  0x31   : > { %p193_p12 = scmp.lt.s32.totalorder %s682_s14, 3  ;;  %s440_s7 = sshll.u32 %s770_s25, 1 }
  0x32   : > { %s441_s8 = sshll.u32 %s678_s13, 5  ;;  %p934_p9 = scmp.ge.s32.totalorder %s682_s14, 1 }
  0x33   : > { %s828_s19 = scalar_lea.hbm %s925_s1, %s441_s8  ;;  %s179_s20 = scalar_lea.vmem [#allocation6], %s440_s7 }
  0x34   : > { %p821_p11 = pnand %p934_p9, %p193_p12  ;;  %s188_s26 = sshll.u32 %s179_s20, 4  ;;  %s189_s26 = int_to_ptr.vmem [resolvable:$true] %s188_s26 }
  0x35   : > { %s176_s30 = scalar_lea.sflag [#allocation7], %s770_s25  ;;  %s566_s4 = scalar_lea.hbm %s828_s19, 32 }
  0x36   : > { %s935_s15 = scalar_select %p821_p11, 1, 0 }
  0x37   : > { %p567_p1 = scmp.ne.s32.totalorder %s828_s19, %s566_s4  ;;  %s571_s28 = scalar_lea.hbm %s925_s1, 64 }
  0x38   : > { %p572_p2 = scmp.lt.u32.totalorder %s828_s19, %s925_s1  ;;  %p573_p5 = scmp.lt.u32.totalorder %s571_s28, %s566_s4 }
  0x39   : > { %p569_p6 = pnand %p567_p1, %p538_p3  ;;  %p575_p7 = scmp.lt.u32.totalorder %s566_s4, %s828_s19 }
  0x3a   : > { %p574_p4 = por %p573_p5, %p572_p2 }
  0x3b   : > { %p570_p13 = pneg %p569_p6 }
  0x3c   : > { %p576_p10 = por %p575_p7, %p574_p4 }
  0x3e   : > { %p577_p12 = pnand %p576_p10, %p570_p13 }
  0x40   : > { %580 = shalt.err (!%p577_p12)
}
  0x41   : > { %s581_s25 = scalar_lea.vmem %s189_s26, 32  ;;  %s687_s7 = smov [#allocation6]  }
  0x42   : > { %p582_p9 = scmp.ne.s32.totalorder %s189_s26, %s581_s25  ;;  %s586_s8 = sshll.u32 %s687_s7, 4  ;;  %s587_s8 = int_to_ptr.vmem [resolvable:$false] %s586_s8 }
  0x43   : > { %s588_s16 = scalar_lea.vmem %s587_s8, 64  ;;  %p589_p8 = scmp.lt.s32.totalorder %s189_s26, %s587_s8 }
  0x44   : > { %p584_p1 = pnand %p582_p9, %p538_p3  ;;  %p590_p11 = scmp.lt.s32.totalorder %s588_s16, %s581_s25 }
  0x46   : > { %p585_p6 = pneg %p584_p1  ;;  %p591_p2 = por %p590_p11, %p589_p8 }
  0x48   : > { %p592_p5 = pnand %p591_p2, %p585_p6 }
  0x4a   : > { %595 = shalt.err (!%p592_p5)
}
  0x4b   : > { %468 = dma.hbm_to_vmem [thread:$0]  (!%p783_p0), %s828_s19, 32, %s189_s26, %s176_s30  }
  0x4c   : > { %p936_p13 = scmp.ne.s32.totalorder %s935_s15, 0 }
  0x4d   : > { %s853_s18 = sand.u32 (!%p936_p13), 1, %s666_s10   ;;  %p937_p8 = scmp.ne.s32.totalorder (!%p936_p13), %s930_s21, 0 }
  0x4e   : > { %197 = sbr.rel (%p936_p13) target bundleno = 366 (0x16e), region = 28  ;;  %s443_s20 = sshll.u32 (!%p936_p13), %s853_s18, 3 }
  0x4f   : > { %s200_s4 = scalar_lea.sflag (!%p936_p13), [#allocation4], %s853_s18  ;;  %s203_s6 = scalar_lea.vmem (!%p936_p13), [#allocation3], %s443_s20 }
  0x55   : > { %649 = dma.done.wait (%p937_p8), %s200_s4, 128  }
  0x56   : > { %651 = vsyncadd (%p937_p8), %s200_s4, 4294967168  ;;  %s444_s5 = sshll.u32 %s853_s18, 1  ;;  %s209_s15 = scalar_lea.sflag [#allocation7], %s853_s18 }
  0x57   : > { %s212_s19 = scalar_lea.vmem [#allocation6], %s444_s5 }
  0x58   : > { %653 = dma.done.wait (%p937_p8), %s209_s15, 32  }
  0x59   : > { %655 = vsyncadd (%p937_p8), %s209_s15, 4294967264  ;;  %v688_v0 = vmov 0.0   ;;  %v248_v1 = vld [vmem:[%s203_s6] sm:$0x3]  ;;  %v446_v2 = vld [vmem:[%s203_s6 + $0x2] sm:$0x3] }
  0x5a   : > { %246 = vst [vmem:[#allocation2] sm:$0x3] %v688_v0  ;;  %v251_v3 = vmax.f32 %v248_v1, %v446_v2  ;;  %v447_v4 = vld [vmem:[%s203_s6 + $0x4] sm:$0x3]  ;;  %v448_v5 = vld [vmem:[%s203_s6 + $0x6] sm:$0x3] }
  0x5b   : > { %v247_v22 = vld [vmem:[%s212_s19] sm:$0x3]  ;;  %vm295_vm5 = vcmask 1041408   ;;  %s237_s21 = scalar_lea.vmem [#allocation8], %s443_s20  ;;  %s450_s30 = sshll.u32 %s674_s12, 7 }
  0x5c   : > { %v254_v6 = vmax.f32 %v251_v3, %v447_v4  ;;  %vm262_vm0 = vcmp.eq.s32.totalorder %v247_v22, 0  ;;  %vm268_vm1 = vcmp.eq.s32.totalorder %v247_v22, 1  ;;  %vm274_vm2 = vcmp.eq.s32.totalorder %v247_v22, 2  ;;  %s324_s26 = sshll.u32 %s237_s21, 4  ;;  %s877_s3 = scalar_lea.hbm %s926_s2, %s450_s30  ;;  %s872_s26 = int_to_ptr.vmem [resolvable:$true] %s324_s26 }
  0x5d   : > { %v263_v24 = vsel %vm262_vm0, %v248_v1, 0.0  ;;  %vm280_vm3 = vcmp.eq.s32.totalorder %v247_v22, 3  ;;  %vm285_vm4 = vcmp.eq.s32.totalorder %v247_v22, 255  ;;  %s310_s25 = scalar_lea.sflag [#allocation5], %s853_s18  ;;  %s596_s7 = scalar_lea.vmem %s872_s26, 128 }
  0x5e   : > { %v257_v7 = vmax.f32 %v254_v6, %v448_v5  ;;  %v269_v25 = vsel %vm268_vm1, %v446_v2, %v263_v24  ;;  %p597_p0 = scmp.ne.s32.totalorder %s872_s26, %s596_s7  ;;  %p938_p3 = scmp.ne.s32.totalorder %s931_s22, 0 }
  0x5f   : > { %v275_v26 = vsel %vm274_vm2, %v447_v4, %v269_v25  ;;  %s689_s12 = smov [#allocation8]  }
  0x60   : > { %v258_v8 = vsub.f32 %v248_v1, %v257_v7  ;;  %v264_v9 = vsub.f32 %v446_v2, %v257_v7  ;;  %v270_v10 = vsub.f32 %v447_v4, %v257_v7  ;;  %v276_v11 = vsub.f32 %v448_v5, %v257_v7  ;;  %p598_p11 = pnand %p597_p0, %p938_p3  ;;  %s600_s8 = sshll.u32 %s689_s12, 4  ;;  %s601_s8 = int_to_ptr.vmem [resolvable:$false] %s600_s8 }
  0x61   : > { %v281_v29 = vsel %vm280_vm3, %v448_v5, %v275_v26  ;;  %v288_v32 = vld [vmem:[#allocation2] sm:$0x3]  ;;  %s602_s16 = scalar_lea.vmem %s601_s8, 256  ;;  %p603_p7 = scmp.lt.s32.totalorder %s872_s26, %s601_s8 }
  0x62   : > { %v259_v12 = vmul.f32 1.442695, %v258_v8  ;;  %v265_v13 = vmul.f32 1.442695, %v264_v9  ;;  %v271_v14 = vmul.f32 1.442695, %v270_v10  ;;  %p599_p4 = pneg %p598_p11  ;;  %p604_p10 = scmp.lt.s32.totalorder %s602_s16, %s596_s7 }
  0x63   : > { %v277_v15 = vmul.f32 1.442695, %v276_v11 }
  0x64   : > { %526 = vpow2.f32 %v259_v12  ;;  %p605_p12 = por %p604_p10, %p603_p7 }
  0x65   : > { %528 = vpow2.f32 %v265_v13 }
  0x66   : > { %530 = vpow2.f32 %v271_v14  ;;  %p606_p9 = pnand %p605_p12, %p599_p4 }
  0x67   : > { %532 = vpow2.f32 %v277_v15 }
  0x6e   : > { %v527_v16 = vpop.eup %526 }
  0x6f   : > { %v529_v17 = vpop.eup %528 }
  0x70   : > { %v531_v18 = vpop.eup %530  ;;  %v267_v19 = vadd.f32 %v529_v17, %v527_v16 }
  0x71   : > { %v533_v20 = vpop.eup %532 }
  0x72   : > { %v273_v21 = vadd.f32 %v531_v18, %v267_v19 }
  0x74   : > { %v279_v23 = vadd.f32 %v533_v20, %v273_v21 }
  0x76   : > { %534 = vlog2.f32 %v279_v23 }
  0x80   : > { %v535_v27 = vpop.eup %534 }
  0x81   : > { %v283_v28 = vmul.f32 0.6931472, %v535_v27 }
  0x83   : > { %v284_v30 = vadd.f32 %v283_v28, %v257_v7 }
  0x85   : > { %v286_v31 = vsub.f32 %v284_v30, %v281_v29 }
  0x87   : > { %v287_v33 = vsel %vm285_vm4, 0.0, %v286_v31 }
  0x88   : > { %v289_v34 = vadd.f32 %v288_v32, %v287_v33 }
  0x8a   : > { %290 = vst [vmem:[#allocation2] sm:$0x3] %v289_v34 }
  0x91   : > { %v294_v35 = vld [vmem:[#allocation2] sm:$0x3] }
  0x92   : > { %v296_v36 = vsel %vm295_vm5, %v294_v35, 0.0 }
  0x93   : > { %297 = vadd.xlane.f32.xlu0 %v296_v36 }
 0x120   : > { %v298_v37 = vpop.xlane.xlu0 %297 }
 0x121   : > { %v299_v38 = vrot.slane %v298_v37, 4 }
 0x123   : > { %v300_v39 = vadd.f32 %v299_v38, %v298_v37 }
 0x125   : > { %v301_v40 = vrot.slane %v300_v39, 2 }
 0x127   : > { %v302_v41 = vadd.f32 %v301_v40, %v300_v39 }
 0x129   : > { %v303_v42 = vrot.slane %v302_v41, 1 }
 0x12b   : > { %v304_v43 = vadd.f32 %v303_v42, %v302_v41 }
 0x12d   : > { %454 = vpush %v304_v43 }
 0x15e   : > { %s455_s27 = spop %454 }
 0x15f   : > { %v306_v44 = vstv %s455_s27 }
 0x160   : > { %308 = vst [vmem:[%s237_s21] sm:$0xff] %v306_v44 }
 0x161   : > { %609 = shalt.err (!%p606_p9)
}
 0x162   : > { %s610_s18 = scalar_lea.hbm %s877_s3, 128  ;;  %s614_s6 = scalar_lea.hbm %s926_s2, 256 }
 0x163   : > { %p611_p1 = scmp.ne.s32.totalorder %s877_s3, %s610_s18  ;;  %p615_p5 = scmp.lt.u32.totalorder %s877_s3, %s926_s2 }
 0x164   : > { %p616_p13 = scmp.lt.u32.totalorder %s614_s6, %s610_s18  ;;  %p618_p0 = scmp.lt.u32.totalorder %s610_s18, %s877_s3 }
 0x165   : > { %p612_p6 = pnand %p611_p1, %p938_p3 }
 0x166   : > { %p617_p8 = por %p616_p13, %p615_p5 }
 0x167   : > { %p613_p2 = pneg %p612_p6 }
 0x168   : > { %p619_p11 = por %p618_p0, %p617_p8 }
 0x16a   : > { %p620_p4 = pnand %p619_p11, %p613_p2 }
 0x16c   : > { %623 = shalt.err (!%p620_p4)
}
 0x16d   : > { %460 = dma.vmem_to_hbm [thread:$0]  (%p938_p3), %s872_s26, 128, %s877_s3, %s310_s25  }
 0x16e PF: > { %s336_s19 = sand.u32 1, %s662_s9   ;;  %p939_p7 = scmp.ne.s32.totalorder %s932_s24, 0 }
 0x16f   : > { %p940_p10 = scmp.ge.s32.totalorder %s682_s14, 2  ;;  %s337_s21 = scalar_lea.sflag [#allocation5], %s336_s19 }
 0x171   : > { %p470_p12 = pnand %p940_p10, %p939_p7 }
 0x173   : > { %657 = dma.done.wait (!%p470_p12), %s337_s21, 128  }
 0x174   : > { %659 = vsyncadd (!%p470_p12), %s337_s21, 4294967168  ;;  %s21_s14 = sadd.s32 1, %s682_s14   ;;  %s941_s9 = smov %s666_s10 }
 0x175   : > { %p18_p9 = scmp.ge.s32.totalorder %s21_s14, 4   ;;  %s942_s10 = smov %s670_s11 }
 0x176   : > { %s943_s11 = smov %s761_s23  ;;  %s944_s12 = smov %s678_s13 }
 0x177   : > { %s945_s13 = smov %s947_s17  ;;  %20 = sbr.rel (!%p18_p9) target bundleno = 8 (0x8), region = 97 }
 0x17e   :  { %342 = vsyncpa [#allocation4], 1 }
 0x17f   :  { %344 = vsyncpa [#allocation4 + $0x1], 1 }
 0x180   :  { %345 = vsyncpa [#allocation7], 1 }
 0x181   :  { %347 = vsyncpa [#allocation7 + $0x1], 1 }
 0x182   :  { %348 = vsyncpa [#allocation5], 1 }
 0x183   :  { %350 = vsyncpa [#allocation5 + $0x1], 1 }

</bundles_post_ra>
